<compile_context>
chip_gen: v7x
topology: tpu7x:2x2x1
jax: 0.10.0
libtpu: 0.0.40
codegen_flags: <defaults>
</compile_context>

<pallas_src>
import jax
import jax.numpy as jnp
from jax.experimental import pallas as pl
from jax.experimental.pallas import tpu as pltpu

LEAKY_SLOPE = 0.01   # nn.LeakyReLU default negative_slope
BN_EPS = 1e-5        # nn.BatchNorm1d default eps
LANE = 128
SUBLANE = 8
MAX_TB = 1024        # upper bound on batch-tile rows
VMEM_LIMIT = 32 * 1024 * 1024


def _round_up(n, m):
    return ((n + m - 1) // m) * m


def _mlp_kernel(x_ref, w1_ref, b1_ref, w2_ref, b2_ref, o_ref):
    # fc1 with bn1/bn2 pre-folded into (w1, b1); f32 accumulate on the MXU.
    h = jnp.dot(x_ref[...], w1_ref[...], preferred_element_type=jnp.float32) + b1_ref[...]
    # LeakyReLU in f32 (VPU).
    h = jnp.where(h > 0, h, LEAKY_SLOPE * h)
    # fc2 (output lane-padded to a multiple of 128 -> unmasked, lane-dense stores).
    out = jnp.dot(h.astype(w2_ref.dtype), w2_ref[...],
                  preferred_element_type=jnp.float32) + b2_ref[...]
    o_ref[...] = out.astype(o_ref.dtype)


def fold_and_pad_params(raw):
    """Fold eval-mode BN1/BN2 into fc1, transpose fc weights, lane-pad everything."""
    w1 = raw["fc1_w"]          # (fil_num, in_size)  -- PyTorch layout
    c1 = raw["fc1_b"]          # (fil_num,)
    w2 = raw["fc2_w"]          # (2, fil_num)
    c2 = raw["fc2_b"]          # (2,)

    # BN as per-feature affine: y = x * a + t
    a1 = raw["bn1_gamma"] * jax.lax.rsqrt(raw["bn1_var"] + BN_EPS)
    t1 = raw["bn1_beta"] - raw["bn1_mean"] * a1
    a2 = raw["bn2_gamma"] * jax.lax.rsqrt(raw["bn2_var"] + BN_EPS)
    t2 = raw["bn2_beta"] - raw["bn2_mean"] * a2

    w1t = w1.T                                        # (in_size, fil_num)
    w1f = (a1[:, None] * w1t) * a2[None, :]           # bn1 scales rows, bn2 scales cols
    b1f = (t1 @ w1t + c1) * a2 + t2                   # folded bias, (fil_num,)
    w2f = w2.T                                        # (fil_num, 2)
    b2f = c2                                          # (2,)

    in_size, fil_num = w1f.shape
    n_out = w2f.shape[1]
    in_p = _round_up(in_size, LANE)
    fil_p = _round_up(fil_num, LANE)
    out_p = _round_up(n_out, LANE)

    # Zero padding keeps the math exact: padded x columns hit zero W1 rows,
    # padded hidden lanes are exactly 0 (bias padded with 0, LeakyReLU(0)=0)
    # and hit zero W2 rows.
    w1f = jnp.pad(w1f, ((0, in_p - in_size), (0, fil_p - fil_num)))
    b1f = jnp.pad(b1f, (0, fil_p - fil_num)).reshape(1, fil_p)
    w2f = jnp.pad(w2f, ((0, fil_p - fil_num), (0, out_p - n_out)))
    b2f = jnp.pad(b2f, (0, out_p - n_out)).reshape(1, out_p)

    return {"w1": w1f, "b1": b1f, "w2": w2f, "b2": b2f,
            "in_size": in_size, "n_out": n_out}


def _pick_batch_tile(B, in_p, fil_p, out_p, itemsize):
    """Largest sublane-aligned batch tile <= MAX_TB whose double-buffered working
    set (x tile + out tile, plus resident weights/biases) fits in the VMEM budget."""
    resident = (in_p * fil_p + fil_p * out_p) * itemsize + (fil_p + out_p) * 4
    budget = VMEM_LIMIT // 2 - resident          # headroom for compiler scratch
    per_row = 2 * (in_p * itemsize + out_p * 4)  # double-buffered x tile + f32 out tile
    tb = max(SUBLANE, (budget // max(per_row, 1)) // SUBLANE * SUBLANE)
    tb = min(tb, MAX_TB, _round_up(B, SUBLANE))
    return int(tb)


def mlp_forward(x, params, matmul_dtype=jnp.float32):
    B, in_size = x.shape
    assert in_size == params["in_size"]
    in_p, fil_p = params["w1"].shape
    out_p = params["w2"].shape[1]
    n_out = params["n_out"]
    itemsize = jnp.dtype(matmul_dtype).itemsize

    # Batch tiling: lane-dense, sublane-aligned tiles; small B collapses to one tile.
    tb = _pick_batch_tile(B, in_p, fil_p, out_p, itemsize)
    b_pad = _round_up(B, tb)

    xp = jnp.pad(x, ((0, b_pad - B), (0, in_p - in_size))).astype(matmul_dtype)
    w1 = params["w1"].astype(matmul_dtype)
    w2 = params["w2"].astype(matmul_dtype)
    b1 = params["b1"]   # biases stay f32 (added post-accumulation)
    b2 = params["b2"]

    grid = (b_pad // tb,)

    bytes_accessed = int(
        xp.size * itemsize + w1.size * itemsize + w2.size * itemsize
        + b1.size * 4 + b2.size * 4 + b_pad * out_p * 4
    )
    cost = pl.CostEstimate(
        flops=int(2 * b_pad * (in_p * fil_p + fil_p * out_p)),
        transcendentals=0,
        bytes_accessed=bytes_accessed,
    )

    out_padded = pl.pallas_call(
        _mlp_kernel,
        out_shape=jax.ShapeDtypeStruct((b_pad, out_p), jnp.float32),
        grid_spec=pltpu.PrefetchScalarGridSpec(
            num_scalar_prefetch=0,
            grid=grid,
            in_specs=[
                pl.BlockSpec((tb, in_p), lambda i: (i, 0)),     # x: batch-tiled
                pl.BlockSpec((in_p, fil_p), lambda i: (0, 0)),  # W1: resident
                pl.BlockSpec((1, fil_p), lambda i: (0, 0)),     # b1: resident
                pl.BlockSpec((fil_p, out_p), lambda i: (0, 0)), # W2: resident
                pl.BlockSpec((1, out_p), lambda i: (0, 0)),     # b2: resident
            ],
            out_specs=pl.BlockSpec((tb, out_p), lambda i: (i, 0)),
        ),
        compiler_params=pltpu.CompilerParams(
            dimension_semantics=("parallel",),       # megacore split on v7x
            vmem_limit_bytes=VMEM_LIMIT,             # explicit; safe for v7x's 64 MiB VMEM
        ),
        cost_estimate=cost,
    )(xp, w1, b1, w2, b2)

    return out_padded[:B, :n_out]


def init_raw_params(key, in_size, fil_num):
    ks = jax.random.split(key, 8)
    return {
        "fc1_w": jax.random.normal(ks[0], (fil_num, in_size), jnp.float32) * 0.1,
        "fc1_b": jax.random.normal(ks[1], (fil_num,), jnp.float32) * 0.1,
        "fc2_w": jax.random.normal(ks[2], (2, fil_num), jnp.float32) * 0.1,
        "fc2_b": jax.random.normal(ks[3], (2,), jnp.float32) * 0.1,
        "bn1_gamma": 1.0 + 0.1 * jax.random.normal(ks[4], (in_size,), jnp.float32),
        "bn1_beta": 0.1 * jax.random.normal(ks[5], (in_size,), jnp.float32),
        "bn1_mean": 0.1 * jax.random.normal(ks[6], (in_size,), jnp.float32),
        "bn1_var": 1.0 + 0.1 * jnp.abs(jax.random.normal(ks[7], (in_size,), jnp.float32)),
        "bn2_gamma": jnp.ones((fil_num,), jnp.float32),
        "bn2_beta": jnp.zeros((fil_num,), jnp.float32),
        "bn2_mean": jnp.zeros((fil_num,), jnp.float32),
        "bn2_var": jnp.ones((fil_num,), jnp.float32),
    }


def mlp_reference(x, p):
    """Pure-JAX eval-mode forward of the original (unfused) module."""
    xh = (x - p["bn1_mean"]) * jax.lax.rsqrt(p["bn1_var"] + BN_EPS) * p["bn1_gamma"] + p["bn1_beta"]
    h = xh @ p["fc1_w"].T + p["fc1_b"]
    h = (h - p["bn2_mean"]) * jax.lax.rsqrt(p["bn2_var"] + BN_EPS) * p["bn2_gamma"] + p["bn2_beta"]
    h = jnp.where(h > 0, h, LEAKY_SLOPE * h)
    return h @ p["fc2_w"].T + p["fc2_b"]


if __name__ == "__main__":
    key = jax.random.PRNGKey(0)

    # --- main small-shape test (B=8, in=32, hidden=16) ---
    B, IN_SIZE, FIL_NUM = 8, 32, 16
    kx, kp, kx2, kp2 = jax.random.split(key, 4)
    x = jax.random.normal(kx, (B, IN_SIZE), jnp.float32)

    raw = init_raw_params(kp, IN_SIZE, FIL_NUM)
    params = fold_and_pad_params(raw)
    ref = mlp_reference(x, raw)

    # f32 matmul path (exact vs. reference up to FP associativity).
    out = jax.block_until_ready(mlp_forward(x, params, matmul_dtype=jnp.float32))
    assert out.shape == (B, 2)
    assert jnp.allclose(out, ref, atol=1e-4, rtol=1e-4), "f32 kernel mismatch vs JAX reference"

    # bf16 matmul-operand path (HBM-roofline optimization); f32 accumulate, so only
    # input-rounding error -> looser tolerance.
    out_bf16 = jax.block_until_ready(mlp_forward(x, params, matmul_dtype=jnp.bfloat16))
    assert out_bf16.shape == (B, 2)
    assert jnp.allclose(out_bf16, ref, atol=3e-2, rtol=3e-2), "bf16 kernel mismatch vs JAX reference"

    # --- ragged-batch test (exercises batch tiling / padding path) ---
    B2, IN2, FIL2 = 200, 64, 32
    x2 = jax.random.normal(kx2, (B2, IN2), jnp.float32)
    raw2 = init_raw_params(kp2, IN2, FIL2)
    params2 = fold_and_pad_params(raw2)
    ref2 = mlp_reference(x2, raw2)
    out2 = jax.block_until_ready(mlp_forward(x2, params2, matmul_dtype=jnp.float32))
    assert out2.shape == (B2, 2)
    assert jnp.allclose(out2, ref2, atol=1e-4, rtol=1e-4), "ragged-batch kernel mismatch"

    print("KERNEL_OK")
</pallas_src>

<mosaic_0001>
module attributes {stable_mosaic.version = 11 : i64} {
  func.func @_mlp_kernel(%arg0: i32, %arg1: memref<8x128xf32, #tpu.memory_space<vmem>>, %arg2: memref<128x128xf32, #tpu.memory_space<vmem>>, %arg3: memref<1x128xf32, #tpu.memory_space<vmem>>, %arg4: memref<128x128xf32, #tpu.memory_space<vmem>>, %arg5: memref<1x128xf32, #tpu.memory_space<vmem>>, %arg6: memref<8x128xf32, #tpu.memory_space<vmem>>) attributes {dimension_semantics = [#tpu.dimension_semantics<parallel>], iteration_bounds = array<i64: 1>, scalar_prefetch = 0 : i64, scratch_operands = 0 : i64, tpu.core_type = #tpu.core_type<tc>, window_params = [{transform_indices = @transform_0, window_bounds = array<i64: 8, 128>}, {pipeline_mode = #tpu.pipeline_mode<synchronous>, transform_indices = @transform_1, window_bounds = array<i64: 128, 128>}, {pipeline_mode = #tpu.pipeline_mode<synchronous>, transform_indices = @transform_2, window_bounds = array<i64: 1, 128>}, {pipeline_mode = #tpu.pipeline_mode<synchronous>, transform_indices = @transform_3, window_bounds = array<i64: 128, 128>}, {pipeline_mode = #tpu.pipeline_mode<synchronous>, transform_indices = @transform_4, window_bounds = array<i64: 1, 128>}, {transform_indices = @transform_5, window_bounds = array<i64: 8, 128>}]} {
    %c0 = arith.constant 0 : index
    %c0_0 = arith.constant 0 : index
    %0 = vector.load %arg1[%c0, %c0_0] : memref<8x128xf32, #tpu.memory_space<vmem>>, vector<8x128xf32>
    %c0_1 = arith.constant 0 : index
    %c0_2 = arith.constant 0 : index
    %1 = vector.load %arg2[%c0_1, %c0_2] : memref<128x128xf32, #tpu.memory_space<vmem>>, vector<128x128xf32>
    %cst = arith.constant dense<0.000000e+00> : vector<8x128xf32>
    %2 = tpu.matmul %0, %1, %cst {dimension_numbers = #tpu.dot_dimension_numbers<[1], [0], [0], [1], [0, 0, 1, 1], [], []>} : vector<8x128xf32>, vector<128x128xf32>, vector<8x128xf32> -> vector<8x128xf32>
    %c0_3 = arith.constant 0 : index
    %c0_4 = arith.constant 0 : index
    %3 = vector.load %arg3[%c0_3, %c0_4] : memref<1x128xf32, #tpu.memory_space<vmem>>, vector<1x128xf32>
    %4 = vector.broadcast %3 : vector<1x128xf32> to vector<8x128xf32>
    %5 = arith.addf %2, %4 : vector<8x128xf32>
    %cst_5 = arith.constant 0.000000e+00 : f32
    %6 = vector.broadcast %cst_5 : f32 to vector<8x128xf32>
    %7 = arith.cmpf ogt, %5, %6 : vector<8x128xf32>
    %cst_6 = arith.constant 0.00999999977 : f32
    %8 = vector.broadcast %cst_6 : f32 to vector<8x128xf32>
    %9 = arith.mulf %8, %5 : vector<8x128xf32>
    %10 = arith.select %7, %5, %9 : vector<8x128xi1>, vector<8x128xf32>
    %c0_7 = arith.constant 0 : index
    %c0_8 = arith.constant 0 : index
    %11 = vector.load %arg4[%c0_7, %c0_8] : memref<128x128xf32, #tpu.memory_space<vmem>>, vector<128x128xf32>
    %cst_9 = arith.constant dense<0.000000e+00> : vector<8x128xf32>
    %12 = tpu.matmul %10, %11, %cst_9 {dimension_numbers = #tpu.dot_dimension_numbers<[1], [0], [0], [1], [0, 0, 1, 1], [], []>} : vector<8x128xf32>, vector<128x128xf32>, vector<8x128xf32> -> vector<8x128xf32>
    %c0_10 = arith.constant 0 : index
    %c0_11 = arith.constant 0 : index
    %13 = vector.load %arg5[%c0_10, %c0_11] : memref<1x128xf32, #tpu.memory_space<vmem>>, vector<1x128xf32>
    %14 = vector.broadcast %13 : vector<1x128xf32> to vector<8x128xf32>
    %15 = arith.addf %12, %14 : vector<8x128xf32>
    %c0_12 = arith.constant 0 : index
    %c0_13 = arith.constant 0 : index
    %16 = vector.load %arg6[%c0_12, %c0_13] : memref<8x128xf32, #tpu.memory_space<vmem>>, vector<8x128xf32>
    tpu.vector_store %arg6[%c0_12, %c0_13], %15 {strides = array<i32>} : memref<8x128xf32, #tpu.memory_space<vmem>>, vector<8x128xf32>,
    return
  }
  func.func @transform_0(%arg0: i32) -> (i32, i32) {
    %c0_i32 = arith.constant 0 : i32
    %c0_i32_0 = arith.constant 0 : i32
    return %arg0, %c0_i32 : i32, i32
  }
  func.func @transform_1(%arg0: i32) -> (i32, i32) {
    %c0_i32 = arith.constant 0 : i32
    %c0_i32_0 = arith.constant 0 : i32
    %c0_i32_1 = arith.constant 0 : i32
    return %c0_i32, %c0_i32_0 : i32, i32
  }
  func.func @transform_2(%arg0: i32) -> (i32, i32) {
    %c0_i32 = arith.constant 0 : i32
    %c0_i32_0 = arith.constant 0 : i32
    %c0_i32_1 = arith.constant 0 : i32
    return %c0_i32, %c0_i32_0 : i32, i32
  }
  func.func @transform_3(%arg0: i32) -> (i32, i32) {
    %c0_i32 = arith.constant 0 : i32
    %c0_i32_0 = arith.constant 0 : i32
    %c0_i32_1 = arith.constant 0 : i32
    return %c0_i32, %c0_i32_0 : i32, i32
  }
  func.func @transform_4(%arg0: i32) -> (i32, i32) {
    %c0_i32 = arith.constant 0 : i32
    %c0_i32_0 = arith.constant 0 : i32
    %c0_i32_1 = arith.constant 0 : i32
    return %c0_i32, %c0_i32_0 : i32, i32
  }
  func.func @transform_5(%arg0: i32) -> (i32, i32) {
    %c0_i32 = arith.constant 0 : i32
    %c0_i32_0 = arith.constant 0 : i32
    return %arg0, %c0_i32 : i32, i32
  }
}

</mosaic_0001>

<bundles_post_ra>
// kernel: tpu_custom_call.1
= control target key start
LH: loop header
LB: loop body
LE: loop exit
PB: predicated region body
PF: predicated region fallthrough
CT: control target
= control target key end

     0   :  { %10 = vsyncpa [#allocation3], 0  ;;  %s639_s0 = inlined_call_operand.hbm [shape: f32[8,128], index: 0, kind: input, shape index: {}]   ;;  %s640_s1 = inlined_call_operand.hbm [shape: f32[128,128], index: 1, kind: input, shape index: {}]   ;;  %s641_s2 = inlined_call_operand.vmem [shape: f32[1,128], index: 2, kind: input, shape index: {}]   ;;  %s642_s3 = inlined_call_operand.hbm [shape: f32[128,128], index: 3, kind: input, shape index: {}]   ;;  %s643_s4 = inlined_call_operand.vmem [shape: f32[1,128], index: 4, kind: input, shape index: {}]   ;;  %s644_s5 = inlined_call_operand.hbm [shape: f32[8,128], index: 5, kind: output, shape index: {}]  }
   0x1   :  { %11 = vsyncpa [#allocation6], 0 }
   0x2   :  { %12 = vsyncpa [#allocation4], 0  ;;  %s524_s18 = smov [#allocation5]   ;;  %s430_s22 = scalar_lea.hbm %s640_s1, 2048 }
   0x3   :  { %s28_s19 = sshll.u32 %s524_s18, 4  ;;  %p431_p0 = scmp.ne.s32.totalorder %s640_s1, %s430_s22  ;;  %s29_s19 = int_to_ptr.vmem [resolvable:$true] %s28_s19 }
   0x4   :  { %p434_p1 = scmp.lt.u32.totalorder %s430_s22, %s640_s1 }
   0x6   :  { %p436_p2 = pnand %p434_p1, %p431_p0 }
   0x8   :  { %439 = shalt.err (!%p436_p2)
}
   0x9   :  { %s440_s27 = scalar_lea.vmem %s29_s19, 2048  ;;  %p445_p4 = scmp.lt.s32.totalorder %s29_s19, %s29_s19 }
   0xa   :  { %p441_p3 = scmp.ne.s32.totalorder %s29_s19, %s440_s27  ;;  %p446_p5 = scmp.lt.s32.totalorder %s440_s27, %s440_s27 }
   0xc   :  { %p447_p6 = por %p446_p5, %p445_p4 }
   0xe   :  { %p448_p7 = pnand %p447_p6, %p441_p3 }
  0x10   :  { %451 = shalt.err (!%p448_p7)
}
  0x11   :  { %s525_s28 = smov 128   ;;  %s526_s29 = smov 8  }
  0x12   :  { %34 = dma.hbm_to_vmem [thread:$0]  %s640_s1, 2048, %s29_s19, [#allocation6], %s525_s28, %s525_s28, %s526_s29  }
  0x13   :  { %s527_s7 = smov [#allocation2]   ;;  %s528_s9 = smov [#allocation7]  }
  0x14   :  { %s19_s8 = sshll.u32 %s527_s7, 4  ;;  %s42_s10 = sshll.u32 %s528_s9, 4  ;;  %s20_s8 = int_to_ptr.vmem [resolvable:$true] %s19_s8  ;;  %s43_s10 = int_to_ptr.vmem [resolvable:$true] %s42_s10 }
  0x15   :  { %s452_s13 = scalar_lea.hbm %s639_s0, 128 }
  0x16   :  { %p453_p8 = scmp.ne.s32.totalorder %s639_s0, %s452_s13  ;;  %p456_p9 = scmp.lt.u32.totalorder %s452_s13, %s639_s0 }
  0x18   :  { %p458_p10 = pnand %p456_p9, %p453_p8 }
  0x1a   :  { %461 = shalt.err (!%p458_p10)
}
  0x1b   :  { %s462_s1 = scalar_lea.vmem %s20_s8, 128  ;;  %p467_p12 = scmp.lt.s32.totalorder %s20_s8, %s20_s8 }
  0x1c   :  { %p463_p11 = scmp.ne.s32.totalorder %s20_s8, %s462_s1  ;;  %p468_p13 = scmp.lt.s32.totalorder %s462_s1, %s462_s1 }
  0x1e   :  { %p469_p0 = por %p468_p13, %p467_p12 }
  0x20   :  { %p470_p1 = pnand %p469_p0, %p463_p11 }
  0x22   :  { %473 = shalt.err (!%p470_p1)
}
  0x23   :  { %22 = dma.hbm_to_vmem [thread:$0]  %s639_s0, 128, %s20_s8, [#allocation3]  }
  0x24   :  { %s474_s22 = scalar_lea.hbm %s642_s3, 2048 }
  0x25   :  { %p475_p2 = scmp.ne.s32.totalorder %s642_s3, %s474_s22  ;;  %p478_p3 = scmp.lt.u32.totalorder %s474_s22, %s642_s3 }
  0x27   :  { %p480_p4 = pnand %p478_p3, %p475_p2 }
  0x29   :  { %483 = shalt.err (!%p480_p4)
}
  0x2a   :  { %s484_s27 = scalar_lea.vmem %s43_s10, 2048  ;;  %p489_p6 = scmp.lt.s32.totalorder %s43_s10, %s43_s10 }
  0x2b   :  { %p485_p5 = scmp.ne.s32.totalorder %s43_s10, %s484_s27  ;;  %p490_p7 = scmp.lt.s32.totalorder %s484_s27, %s484_s27 }
  0x2d   :  { %p491_p8 = por %p490_p7, %p489_p6 }
  0x2f   :  { %p492_p9 = pnand %p491_p8, %p485_p5 }
  0x31   :  { %495 = shalt.err (!%p492_p9)
}
  0x32   :  { %48 = dma.hbm_to_vmem [thread:$0]  %s642_s3, 2048, %s43_s10, [#allocation6], %s525_s28, %s525_s28, %s526_s29  }
  0x33   :  { %518 = dma.done.wait [#allocation3], 128  }
  0x34   :  { %519 = vsyncadd [#allocation3], 4294967168 }
  0x35   :  { %520 = dma.done.wait [#allocation6], 4096  }
  0x36   :  { %521 = vsyncadd [#allocation6], 4294963200  ;;  %v529_v0 = vmov 0.0|0.0   ;;  %vm530_vm0 = vmmov 0   ;;  %v531_v1 = vmov 0.0   ;;  %v61_v2 = vld [vmem:[#allocation5] sm:$0xff] }
  0x37   :  { %373 = vmatprep.subr.bf16.mxu0 %v529_v0  ;;  %335 = vmatprep.mubr.msk.f32.mxu0 %vm530_vm0, %v531_v1  ;;  %v62_v3 = vld [vmem:[#allocation5 + $0x8] sm:$0xff]  ;;  %v63_v4 = vld [vmem:[#allocation5 + $0x10] sm:$0xff]  ;;  %v64_v6 = vld [vmem:[#allocation5 + $0x18] sm:$0xff]  ;;  %s532_s7 = smov [#allocation8]  }
  0x38   :  { %397 = vmatprep.subr.bf16.mxu1 %v529_v0  ;;  %370 = vmatprep.mubr.msk.f32.mxu1 %vm530_vm0, %v531_v1  ;;  %v374_v5 = vpack.c.bf16 %v62_v3, %v61_v2  ;;  %v377_v7 = vpack.c.bf16 %v64_v6, %v63_v4  ;;  %v65_v8 = vld [vmem:[#allocation5 + $0x20] sm:$0xff]  ;;  %v66_v9 = vld [vmem:[#allocation5 + $0x28] sm:$0xff]  ;;  %v159_v12 = vld [vmem:[#allocation7 + $0x10] sm:$0xff]  ;;  %s257_s8 = sshll.u32 %s532_s7, 4  ;;  %s258_s8 = int_to_ptr.vmem [resolvable:$true] %s257_s8 }
  0x39   :  { %v157_v10 = vld [vmem:[#allocation7] sm:$0xff]  ;;  %v158_v11 = vld [vmem:[#allocation7 + $0x8] sm:$0xff]  ;;  %v160_v13 = vld [vmem:[#allocation7 + $0x18] sm:$0xff]  ;;  %v380_v14 = vpack.c.bf16 %v66_v9, %v65_v8  ;;  %s496_s9 = scalar_lea.vmem %s258_s8, 128  ;;  %p501_p11 = scmp.lt.s32.totalorder %s258_s8, %s258_s8 }
  0x3a   :  { %375 = vmatpush3.bf16.msra.mxu0 %v374_v5  ;;  %v398_v15 = vpack.c.bf16 %v158_v11, %v157_v10  ;;  %v67_v16 = vld [vmem:[#allocation5 + $0x30] sm:$0xff]  ;;  %v68_v17 = vld [vmem:[#allocation5 + $0x38] sm:$0xff]  ;;  %v401_v18 = vpack.c.bf16 %v160_v13, %v159_v12  ;;  %v161_v19 = vld [vmem:[#allocation7 + $0x20] sm:$0xff]  ;;  %p497_p10 = scmp.ne.s32.totalorder %s258_s8, %s496_s9  ;;  %p502_p12 = scmp.lt.s32.totalorder %s496_s9, %s496_s9 }
  0x3b   :  { %376 = vmatprep.subr.bf16.mxu0 %v529_v0  ;;  %v162_v20 = vld [vmem:[#allocation7 + $0x28] sm:$0xff]  ;;  %v383_v21 = vpack.c.bf16 %v68_v17, %v67_v16  ;;  %v69_v22 = vld [vmem:[#allocation5 + $0x40] sm:$0xff]  ;;  %v163_v25 = vld [vmem:[#allocation7 + $0x30] sm:$0xff] }
  0x3c   :  { %399 = vmatpush3.bf16.msra.mxu1 %v398_v15  ;;  %v70_v23 = vld [vmem:[#allocation5 + $0x48] sm:$0xff]  ;;  %v404_v24 = vpack.c.bf16 %v162_v20, %v161_v19  ;;  %v164_v26 = vld [vmem:[#allocation7 + $0x38] sm:$0xff]  ;;  %v71_v28 = vld [vmem:[#allocation5 + $0x50] sm:$0xff]  ;;  %p503_p13 = por %p502_p12, %p501_p11 }
  0x3d   :  { %400 = vmatprep.subr.bf16.mxu1 %v529_v0  ;;  %v386_v27 = vpack.c.bf16 %v70_v23, %v69_v22  ;;  %v72_v29 = vld [vmem:[#allocation5 + $0x58] sm:$0xff]  ;;  %v407_v30 = vpack.c.bf16 %v164_v26, %v163_v25  ;;  %v165_v31 = vld [vmem:[#allocation7 + $0x40] sm:$0xff]  ;;  %v166_v32 = vld [vmem:[#allocation7 + $0x48] sm:$0xff] }
  0x3e   :  { %378 = vmatpush3.bf16.msra.mxu0 %v377_v7  ;;  %v389_v33 = vpack.c.bf16 %v72_v29, %v71_v28  ;;  %v73_v34 = vld [vmem:[#allocation5 + $0x60] sm:$0xff]  ;;  %v74_v35 = vld [vmem:[#allocation5 + $0x68] sm:$0xff]  ;;  %v410_v36 = vpack.c.bf16 %v166_v32, %v165_v31  ;;  %v167_v37 = vld [vmem:[#allocation7 + $0x50] sm:$0xff]  ;;  %p504_p0 = pnand %p503_p13, %p497_p10 }
  0x3f   :  { %379 = vmatprep.subr.bf16.mxu0 %v529_v0  ;;  %v168_v38 = vld [vmem:[#allocation7 + $0x58] sm:$0xff]  ;;  %v392_v39 = vpack.c.bf16 %v74_v35, %v73_v34  ;;  %v75_v40 = vld [vmem:[#allocation5 + $0x70] sm:$0xff]  ;;  %v169_v43 = vld [vmem:[#allocation7 + $0x60] sm:$0xff] }
  0x40   :  { %402 = vmatpush3.bf16.msra.mxu1 %v401_v18  ;;  %v76_v41 = vld [vmem:[#allocation5 + $0x78] sm:$0xff]  ;;  %v413_v42 = vpack.c.bf16 %v168_v38, %v167_v37  ;;  %v170_v44 = vld [vmem:[#allocation7 + $0x68] sm:$0xff]  ;;  %v171_v48 = vld [vmem:[#allocation7 + $0x70] sm:$0xff] }
  0x41   :  { %403 = vmatprep.subr.bf16.mxu1 %v529_v0  ;;  %v395_v45 = vpack.c.bf16 %v76_v41, %v75_v40  ;;  %v416_v46 = vpack.c.bf16 %v170_v44, %v169_v43  ;;  %v60_v47 = vld [vmem:[#allocation2] sm:$0xff] }
  0x42   :  { %381 = vmatpush3.bf16.msra.mxu0 %v380_v14  ;;  %v172_v49 = vld [vmem:[#allocation7 + $0x78] sm:$0xff] }
  0x43   :  { %382 = vmatprep.subr.bf16.mxu0 %v529_v0  ;;  %v419_v50 = vpack.c.bf16 %v172_v49, %v171_v48  ;;  %v267_v51 = vld [vmem:[%s641_s2] ss:$0 sm:$0xff] }
  0x44   :  { %405 = vmatpush3.bf16.msra.mxu1 %v404_v24  ;;  %v268_v57 = vld [vmem:[%s643_s4] ss:$0 sm:$0xff] }
  0x45   :  { %406 = vmatprep.subr.bf16.mxu1 %v529_v0 }
  0x46   :  { %384 = vmatpush3.bf16.msra.mxu0 %v383_v21 }
  0x47   :  { %385 = vmatprep.subr.bf16.mxu0 %v529_v0 }
  0x48   :  { %408 = vmatpush3.bf16.msra.mxu1 %v407_v30 }
  0x49   :  { %409 = vmatprep.subr.bf16.mxu1 %v529_v0 }
  0x4a   :  { %387 = vmatpush3.bf16.msra.mxu0 %v386_v27 }
  0x4b   :  { %388 = vmatprep.subr.bf16.mxu0 %v529_v0 }
  0x4c   :  { %411 = vmatpush3.bf16.msra.mxu1 %v410_v36 }
  0x4d   :  { %412 = vmatprep.subr.bf16.mxu1 %v529_v0 }
  0x4e   :  { %390 = vmatpush3.bf16.msra.mxu0 %v389_v33 }
  0x4f   :  { %391 = vmatprep.subr.bf16.mxu0 %v529_v0 }
  0x50   :  { %414 = vmatpush3.bf16.msra.mxu1 %v413_v42 }
  0x51   :  { %415 = vmatprep.subr.bf16.mxu1 %v529_v0 }
  0x52   :  { %393 = vmatpush3.bf16.msra.mxu0 %v392_v39 }
  0x53   :  { %394 = vmatprep.subr.bf16.mxu0 %v529_v0 }
  0x54   :  { %417 = vmatpush3.bf16.msra.mxu1 %v416_v46 }
  0x55   :  { %418 = vmatprep.subr.bf16.mxu1 %v529_v0 }
  0x56   :  { %396 = vmatpush3.bf16.msra.mxu0 %v395_v45 }
  0x58   :  { %420 = vmatpush3.bf16.msra.mxu1 %v419_v50 }
  0x59   :  { %336 = vmatmul.mubr.f32.vlgmr.msra.gmra.mrb[0].mxu0 %v60_v47 }
 0x12c   :  { %v150_v52 = vpop.f32.mrb[0].mxu0 }
 0x12d   :  { %v151_v53 = vadd.f32 %v267_v51, %v150_v52  ;;  %v337_v54 = vpop.f32.mrb[1].mxu0 }
 0x12f   :  { %v155_v55 = vmul.f32 0.01, %v151_v53  ;;  %vm154_vm1 = vcmp.gt.f32.partialorder %v151_v53, 0.0 }
 0x131   :  { %v156_v56 = vsel %vm154_vm1, %v151_v53, %v155_v55 }
 0x132   :  { %371 = vmatmul.mubr.f32.vlgmr.msra.gmra.mrb[0].mxu1 %v156_v56 }
 0x205   :  { %v246_v58 = vpop.f32.mrb[0].mxu1 }
 0x206   :  { %v247_v59 = vadd.f32 %v268_v57, %v246_v58  ;;  %v372_v60 = vpop.f32.mrb[1].mxu1 }
 0x208   :  { %250 = vst [vmem:[#allocation8] sm:$0xff] %v247_v59 }
 0x209   :  { %507 = shalt.err (!%p504_p0)
}
 0x20a   :  { %s508_s11 = scalar_lea.hbm %s644_s5, 128 }
 0x20b   :  { %p509_p1 = scmp.ne.s32.totalorder %s644_s5, %s508_s11  ;;  %p512_p2 = scmp.lt.u32.totalorder %s508_s11, %s644_s5 }
 0x20d   :  { %p514_p3 = pnand %p512_p2, %p509_p1 }
 0x20f   :  { %517 = shalt.err (!%p514_p3)
}
 0x210   :  { %260 = dma.vmem_to_hbm [thread:$0]  %s258_s8, 128, %s644_s5, [#allocation4]  }
 0x211   :  { %522 = dma.done.wait [#allocation4], 128  }
 0x212   :  { %523 = vsyncadd [#allocation4], 4294967168 }
 0x213   :  { %264 = vsyncpa [#allocation3], 1 }
 0x214   :  { %265 = vsyncpa [#allocation6], 1 }
 0x215   :  { %266 = vsyncpa [#allocation4], 1 }

</bundles_post_ra>
